<compile_context>
chip_gen: v5e
topology: v5e:2x2
jax: 0.10.0
libtpu: 0.0.40
codegen_flags: <defaults>
</compile_context>

<pallas_src>
import jax
import jax.numpy as jnp
from jax.experimental import pallas as pl
from jax.experimental.pallas import tpu as pltpu

_LANE = 128      # hidden dim padded to a multiple of this (lane-dense MXU operands)
_SUBLANE = 8     # sublane granule for the batch (second-to-last) block dim
# Only single-buffer the resident weights once they are big enough to matter
# for VMEM (review: irrelevant at HID~128, essential for HID~4K on v7x).
_SINGLE_BUFFER_WEIGHT_BYTES = 2 << 20


def _round_up(x, m):
    return ((x + m - 1) // m) * m


def _policy_mlp_kernel(obs_ref, w1_ref, b1_ref, w2_ref, b2_ref, act_ref):
    # obs_ref: [bt, OBS]  f32  (raw HBM tile; cast to bf16 here -- VPU slack)
    # w1_ref : [OBS, HIDP] bf16    b1_ref: [1, HIDP] f32
    # w2_ref : [HIDP, ACT] bf16    b2_ref: [1, ACT]  f32
    # act_ref: [bt, ACT]  f32  (narrow output; masked vst is far cheaper than
    #                           the 16x-inflated lane-padded store it replaces)
    obs = obs_ref[...].astype(jnp.bfloat16)
    # Layer 1: MXU matmul with f32 accumulation; bias-add + tanh in f32.
    h = jnp.tanh(
        jnp.dot(obs, w1_ref[...], preferred_element_type=jnp.float32) + b1_ref[...]
    )
    # Layer 2: feed h back to the MXU as bf16, accumulate f32.
    act = jnp.tanh(
        jnp.dot(h.astype(jnp.bfloat16), w2_ref[...],
                preferred_element_type=jnp.float32) + b2_ref[...]
    )
    act_ref[...] = act.astype(act_ref.dtype)


def prepare_params(params):
    """One-time parameter prep: pad HID to a lane multiple, cast weights to bf16.

    Do this ONCE and reuse across forward calls (hoisted out of policy_forward
    so the pad/cast is not re-executed every step under jit).  Zero padding is
    numerically exact: padded h columns are tanh(0) = 0 and meet zero W2 rows.
    """
    w1 = jnp.asarray(params["w1"], jnp.float32)
    b1 = jnp.asarray(params["b1"], jnp.float32).reshape(1, -1)
    w2 = jnp.asarray(params["w2"], jnp.float32)
    b2 = jnp.asarray(params["b2"], jnp.float32).reshape(1, -1)

    obs_dim, hid = w1.shape
    act_dim = w2.shape[1]
    hidp = _round_up(hid, _LANE)

    w1p = jnp.zeros((obs_dim, hidp), jnp.bfloat16).at[:, :hid].set(
        w1.astype(jnp.bfloat16))
    b1p = jnp.zeros((1, hidp), jnp.float32).at[:, :hid].set(b1)
    w2p = jnp.zeros((hidp, act_dim), jnp.bfloat16).at[:hid, :].set(
        w2.astype(jnp.bfloat16))
    b2p = b2

    return {"w1": w1p, "b1": b1p, "w2": w2p, "b2": b2p,
            "obs_dim": obs_dim, "hid_dim": hid, "act_dim": act_dim}


def policy_forward(inputs, prepared, *, batch_tile=256):
    """Pallas forward pass: dict-in / dict-out, mirroring Policy.forward.

    `prepared` must come from `prepare_params` (one-time pad/cast).
    """
    obs = inputs["obs"]
    B, OBS = obs.shape
    assert OBS == prepared["obs_dim"], "obs feature dim mismatch vs params"
    w1p, b1p, w2p, b2p = prepared["w1"], prepared["b1"], prepared["w2"], prepared["b2"]
    HIDP = w1p.shape[1]
    ACT = prepared["act_dim"]

    # Batch tile: 128 for small/medium B so the "parallel" grid axis gets >= 2
    # steps (v7x dual-TensorCore sharding + pipelining depth); clamp to the
    # sublane-rounded batch for tiny B so we don't compute on mostly-garbage rows.
    base_tile = 128 if B <= 512 else batch_tile
    bt = min(base_tile, _round_up(B, _SUBLANE))
    grid = (pl.cdiv(B, bt),)

    weight_bytes = (w1p.size * w1p.dtype.itemsize + b1p.size * b1p.dtype.itemsize
                    + w2p.size * w2p.dtype.itemsize + b2p.size * b2p.dtype.itemsize)
    single_buffer_weights = weight_bytes >= _SINGLE_BUFFER_WEIGHT_BYTES
    w_kwargs = {"pipeline_mode": pl.Buffered(1)} if single_buffer_weights else {}

    # VMEM budget from the actual footprint (weights resident, obs/out tiles
    # double-buffered, f32/bf16 intermediates), 2x headroom, clamped to
    # [16 MiB, 64 MiB]  (64 MiB = v7x physical VMEM).
    io_bytes = 2 * (bt * OBS * 4 + bt * ACT * 4)
    interm_bytes = bt * (OBS * 2 + HIDP * 4 + HIDP * 2 + ACT * 4)
    wmult = 1 if single_buffer_weights else 2
    vmem_limit = int(min(max(2 * (wmult * weight_bytes + io_bytes + interm_bytes)
                             + (4 << 20), 16 << 20), 64 << 20))

    cost = pl.CostEstimate(
        flops=2 * B * (OBS * HIDP + HIDP * ACT),
        transcendentals=B * (HIDP + ACT),
        bytes_accessed=B * OBS * 4 + weight_bytes + B * ACT * 4,
    )

    action = pl.pallas_call(
        _policy_mlp_kernel,
        out_shape=jax.ShapeDtypeStruct((B, ACT), jnp.float32),
        grid=grid,
        in_specs=[
            pl.BlockSpec((bt, OBS), lambda i: (i, 0)),               # raw f32 obs tile
            pl.BlockSpec((OBS, HIDP), lambda i: (0, 0), **w_kwargs),  # W1 (resident)
            pl.BlockSpec((1, HIDP), lambda i: (0, 0), **w_kwargs),    # b1 (resident)
            pl.BlockSpec((HIDP, ACT), lambda i: (0, 0), **w_kwargs),  # W2 (resident)
            pl.BlockSpec((1, ACT), lambda i: (0, 0), **w_kwargs),     # b2 (resident)
        ],
        out_specs=pl.BlockSpec((bt, ACT), lambda i: (i, 0)),          # narrow output
        compiler_params=pltpu.CompilerParams(
            dimension_semantics=("parallel",),
            vmem_limit_bytes=vmem_limit,
        ),
        cost_estimate=cost,
    )(obs, w1p, b1p, w2p, b2p)

    return {"action": action}


def init_params(key, obs_dim, hidden_dim, act_dim):
    """Deterministic PyTorch-Linear-style init: U(-1/sqrt(fan_in), 1/sqrt(fan_in))."""
    k1, k2, k3, k4 = jax.random.split(key, 4)
    lim1 = 1.0 / jnp.sqrt(jnp.float32(obs_dim))
    lim2 = 1.0 / jnp.sqrt(jnp.float32(hidden_dim))
    return {
        "w1": jax.random.uniform(k1, (obs_dim, hidden_dim), jnp.float32, -lim1, lim1),
        "b1": jax.random.uniform(k2, (1, hidden_dim), jnp.float32, -lim1, lim1),
        "w2": jax.random.uniform(k3, (hidden_dim, act_dim), jnp.float32, -lim2, lim2),
        "b2": jax.random.uniform(k4, (1, act_dim), jnp.float32, -lim2, lim2),
    }


def _reference_forward(inputs, params):
    h = jnp.tanh(inputs["obs"] @ params["w1"] + params["b1"])
    return {"action": jnp.tanh(h @ params["w2"] + params["b2"])}


if __name__ == "__main__":
    # Small shapes consistent with a policy network: batch=8, obs=32, hidden=64, act=8.
    B, OBS, HID, ACT = 8, 32, 64, 8

    key = jax.random.PRNGKey(0)
    k_obs, k_params, k_obs2 = jax.random.split(key, 3)

    obs = jax.random.normal(k_obs, (B, OBS), dtype=jnp.float32)
    params = init_params(k_params, OBS, HID, ACT)
    prepared = prepare_params(params)   # one-time pad/cast, reused across calls

    # Case 1: tiny batch (single grid step, bt clamped to 8).
    out = policy_forward({"obs": obs}, prepared)
    action = jax.block_until_ready(out["action"])
    ref = _reference_forward({"obs": obs}, params)["action"]
    assert action.shape == (B, ACT)
    # bf16 weights/activations with f32 accumulation -> loosened tolerance.
    assert jnp.allclose(action, ref, atol=5e-2, rtol=5e-2), "mismatch vs reference (small)"

    # Case 2: ragged batch exercising a multi-step grid (bt=128 -> 3 steps)
    # with a masked partial last batch block and narrow masked output stores.
    B2 = 300
    obs2 = jax.random.normal(k_obs2, (B2, OBS), dtype=jnp.float32)
    out2 = policy_forward({"obs": obs2}, prepared)
    action2 = jax.block_until_ready(out2["action"])
    ref2 = _reference_forward({"obs": obs2}, params)["action"]
    assert action2.shape == (B2, ACT)
    assert jnp.allclose(action2, ref2, atol=5e-2, rtol=5e-2), "mismatch vs reference (ragged)"

    print("KERNEL_OK")
</pallas_src>

<mosaic_0001>
module attributes {stable_mosaic.version = 11 : i64} {
  func.func @_policy_mlp_kernel(%arg0: i32, %arg1: memref<8x32xf32, #tpu.memory_space<vmem>>, %arg2: memref<32x128xbf16, #tpu.memory_space<vmem>>, %arg3: memref<1x128xf32, #tpu.memory_space<vmem>>, %arg4: memref<128x8xbf16, #tpu.memory_space<vmem>>, %arg5: memref<1x8xf32, #tpu.memory_space<vmem>>, %arg6: memref<8x8xf32, #tpu.memory_space<vmem>>) attributes {dimension_semantics = [#tpu.dimension_semantics<parallel>], iteration_bounds = array<i64: 1>, scalar_prefetch = 0 : i64, scratch_operands = 0 : i64, tpu.core_type = #tpu.core_type<tc>, window_params = [{transform_indices = @transform_0, window_bounds = array<i64: 8, 32>}, {pipeline_mode = #tpu.pipeline_mode<synchronous>, transform_indices = @transform_1, window_bounds = array<i64: 32, 128>}, {pipeline_mode = #tpu.pipeline_mode<synchronous>, transform_indices = @transform_2, window_bounds = array<i64: 1, 128>}, {pipeline_mode = #tpu.pipeline_mode<synchronous>, transform_indices = @transform_3, window_bounds = array<i64: 128, 8>}, {pipeline_mode = #tpu.pipeline_mode<synchronous>, transform_indices = @transform_4, window_bounds = array<i64: 1, 8>}, {transform_indices = @transform_5, window_bounds = array<i64: 8, 8>}]} {
    %c0 = arith.constant 0 : index
    %c0_0 = arith.constant 0 : index
    %0 = vector.load %arg1[%c0, %c0_0] : memref<8x32xf32, #tpu.memory_space<vmem>>, vector<8x32xf32>
    %1 = arith.truncf %0 : vector<8x32xf32> to vector<8x32xbf16>
    %c0_1 = arith.constant 0 : index
    %c0_2 = arith.constant 0 : index
    %2 = vector.load %arg2[%c0_1, %c0_2] : memref<32x128xbf16, #tpu.memory_space<vmem>>, vector<32x128xbf16>
    %cst = arith.constant dense<0.000000e+00> : vector<8x128xf32>
    %3 = tpu.matmul %1, %2, %cst {dimension_numbers = #tpu.dot_dimension_numbers<[1], [0], [0], [1], [0, 0, 1, 1], [], []>} : vector<8x32xbf16>, vector<32x128xbf16>, vector<8x128xf32> -> vector<8x128xf32>
    %c0_3 = arith.constant 0 : index
    %c0_4 = arith.constant 0 : index
    %4 = vector.load %arg3[%c0_3, %c0_4] : memref<1x128xf32, #tpu.memory_space<vmem>>, vector<1x128xf32>
    %5 = vector.broadcast %4 : vector<1x128xf32> to vector<8x128xf32>
    %6 = arith.addf %3, %5 : vector<8x128xf32>
    %7 = math.tanh %6 : vector<8x128xf32>
    %8 = arith.truncf %7 : vector<8x128xf32> to vector<8x128xbf16>
    %c0_5 = arith.constant 0 : index
    %c0_6 = arith.constant 0 : index
    %9 = vector.load %arg4[%c0_5, %c0_6] : memref<128x8xbf16, #tpu.memory_space<vmem>>, vector<128x8xbf16>
    %cst_7 = arith.constant dense<0.000000e+00> : vector<8x8xf32>
    %10 = tpu.matmul %8, %9, %cst_7 {dimension_numbers = #tpu.dot_dimension_numbers<[1], [0], [0], [1], [0, 0, 1, 1], [], []>} : vector<8x128xbf16>, vector<128x8xbf16>, vector<8x8xf32> -> vector<8x8xf32>
    %c0_8 = arith.constant 0 : index
    %c0_9 = arith.constant 0 : index
    %11 = vector.load %arg5[%c0_8, %c0_9] : memref<1x8xf32, #tpu.memory_space<vmem>>, vector<1x8xf32>
    %12 = vector.broadcast %11 : vector<1x8xf32> to vector<8x8xf32>
    %13 = arith.addf %10, %12 : vector<8x8xf32>
    %14 = math.tanh %13 : vector<8x8xf32>
    %c0_10 = arith.constant 0 : index
    %c0_11 = arith.constant 0 : index
    %15 = vector.load %arg6[%c0_10, %c0_11] : memref<8x8xf32, #tpu.memory_space<vmem>>, vector<8x8xf32>
    tpu.vector_store %arg6[%c0_10, %c0_11], %14 {strides = array<i32>} : memref<8x8xf32, #tpu.memory_space<vmem>>, vector<8x8xf32>,
    return
  }
  func.func @transform_0(%arg0: i32) -> (i32, i32) {
    %c0_i32 = arith.constant 0 : i32
    %c0_i32_0 = arith.constant 0 : i32
    return %arg0, %c0_i32 : i32, i32
  }
  func.func @transform_1(%arg0: i32) -> (i32, i32) {
    %c0_i32 = arith.constant 0 : i32
    %c0_i32_0 = arith.constant 0 : i32
    %c0_i32_1 = arith.constant 0 : i32
    return %c0_i32, %c0_i32_0 : i32, i32
  }
  func.func @transform_2(%arg0: i32) -> (i32, i32) {
    %c0_i32 = arith.constant 0 : i32
    %c0_i32_0 = arith.constant 0 : i32
    %c0_i32_1 = arith.constant 0 : i32
    return %c0_i32, %c0_i32_0 : i32, i32
  }
  func.func @transform_3(%arg0: i32) -> (i32, i32) {
    %c0_i32 = arith.constant 0 : i32
    %c0_i32_0 = arith.constant 0 : i32
    %c0_i32_1 = arith.constant 0 : i32
    return %c0_i32, %c0_i32_0 : i32, i32
  }
  func.func @transform_4(%arg0: i32) -> (i32, i32) {
    %c0_i32 = arith.constant 0 : i32
    %c0_i32_0 = arith.constant 0 : i32
    %c0_i32_1 = arith.constant 0 : i32
    return %c0_i32, %c0_i32_0 : i32, i32
  }
  func.func @transform_5(%arg0: i32) -> (i32, i32) {
    %c0_i32 = arith.constant 0 : i32
    %c0_i32_0 = arith.constant 0 : i32
    return %arg0, %c0_i32 : i32, i32
  }
}

</mosaic_0001>

<bundles_post_ra>
// kernel: tpu_custom_call.1
= control target key start
LH: loop header
LB: loop body
LE: loop exit
PB: predicated region body
PF: predicated region fallthrough
CT: control target
= control target key end

     0   :  { %s320_s0 = inlined_call_operand.vmem [shape: f32[8,32], index: 0, kind: input, shape index: {}]   ;;  %s321_s1 = inlined_call_operand.vmem [shape: bf16[32,128], index: 1, kind: input, shape index: {}]   ;;  %s322_s2 = inlined_call_operand.vmem [shape: f32[1,128], index: 2, kind: input, shape index: {}]   ;;  %s323_s3 = inlined_call_operand.vmem [shape: bf16[128,8], index: 3, kind: input, shape index: {}]   ;;  %s324_s4 = inlined_call_operand.vmem [shape: f32[1,8], index: 4, kind: input, shape index: {}]   ;;  %s325_s5 = inlined_call_operand.hbm [shape: f32[8,8], index: 5, kind: output, shape index: {}]  }
   0x1   :  { %v205_v0 = vld [vmem:[%s321_s1 + $0x8] sm:$0xff]  ;;  %v213_v1 = vld [vmem:[%s323_s3 + $0x38] sm:$0xff]  ;;  %v204_v2 = vld [vmem:[%s321_s1] sm:$0xff] }
   0x2   :  { %54 = vmatpush.bf16.msra.mxu0 %v205_v0  ;;  %v22_v3 = vld [vmem:[%s320_s0] sm:$0xff]  ;;  %131 = vmatpush.bf16.msra.mxu1 %v213_v1  ;;  %v212_v4 = vld [vmem:[%s323_s3 + $0x30] sm:$0xff] }
   0x3   :  { %10 = vsyncpa [#allocation3], 0  ;;  %v23_v5 = vpack.c.bf16 %v22_v3, %v22_v3  ;;  %vm44_vm0 = vcmask 261120   ;;  %v211_v6 = vld [vmem:[%s323_s3 + $0x28] sm:$0xff]  ;;  %v210_v7 = vld [vmem:[%s323_s3 + $0x20] sm:$0xff]  ;;  %vm145_vm1 = vcmask 64512  }
   0x4   :  { %v209_v8 = vld [vmem:[%s323_s3 + $0x18] sm:$0xff]  ;;  %v208_v9 = vld [vmem:[%s323_s3 + $0x10] sm:$0xff]  ;;  %v207_v10 = vld [vmem:[%s323_s3 + $0x8] sm:$0xff] }
   0x5   :  { %v206_v11 = vld [vmem:[%s323_s3] sm:$0xff]  ;;  %s247_s3 = smov [#allocation2]  }
   0x6   :  { %55 = vmatpush.bf16.msra.mxu0 %v204_v2  ;;  %132 = vmatpush.bf16.msra.mxu1 %v212_v4  ;;  %v215_v12 = vld [vmem:[%s322_s2] ss:$0 sm:$0xff]  ;;  %s152_s17 = sshll.u32 %s247_s3, 4  ;;  %s154_s2 = sshll.u32 %s325_s5, 4  ;;  %s153_s17 = int_to_ptr.vmem [resolvable:$true] %s152_s17  ;;  %s155_s2 = int_to_ptr.hbm [resolvable:$true] %s154_s2 }
   0x7   :  { %v216_v18 = vld [vmem:[%s324_s4] ss:$0 sm:$0xff] }
   0x9   :  { %171 = vmatmul.msk.bf16.vlgmr.msra.gmra.mxu0 %vm44_vm0, %v23_v5 }
   0xa   :  { %133 = vmatpush.bf16.msra.mxu1 %v211_v6 }
   0xe   :  { %134 = vmatpush.bf16.msra.mxu1 %v210_v7 }
  0x12   :  { %135 = vmatpush.bf16.msra.mxu1 %v209_v8 }
  0x16   :  { %136 = vmatpush.bf16.msra.mxu1 %v208_v9 }
  0x1a   :  { %137 = vmatpush.bf16.msra.mxu1 %v207_v10 }
  0x1e   :  { %138 = vmatpush.bf16.msra.mxu1 %v206_v11 }
  0x86   :  { %v57_v13 = vpop.f32.mrf.mxu0 }
  0x87   :  { %v58_v14 = vadd.f32 %v215_v12, %v57_v13 }
  0x89   :  { %217 = vtanh.f32 %v58_v14 }
  0x8e   :  { %v59_v15 = vpop.f32.mrf.mxu0 }
  0x8f   :  { %v218_v16 = vpop.eup %217 }
  0x90   :  { %v62_v17 = vpack.c.bf16 %v218_v16, %v218_v16 }
  0x92   :  { %139 = vmatmul.bf16.vlgmr.msra.gmra.mxu1 %v62_v17 }
 0x10f   :  { %v140_v19 = vpop.f32.mrf.mxu1 }
 0x110   :  { %v141_v20 = vadd.f32 %v216_v18, %v140_v19 }
 0x112   :  { %219 = vtanh.f32 %v141_v20 }
 0x117   :  { %v142_v21 = vpop.f32.mrf.mxu1 }
 0x118   :  { %v220_v22 = vpop.eup %219 }
 0x119   :  { %146 = vst.msk [vmem:[#allocation2] sm:$0xff] %vm145_vm1, %v220_v22 }
 0x11a   :  { %157 = dma.vmem_to_hbm [thread:$0]  %s153_s17, 128, %s155_s2, [#allocation3]  }
 0x11b   :  { %245 = dma.done.wait [#allocation3], 128  }
 0x11c   :  { %246 = vsyncadd [#allocation3], 4294967168 }
 0x11d   :  { %162 = vsyncpa [#allocation3], 1 }

</bundles_post_ra>
